<compile_context>
chip_gen: v7x
topology: tpu7x:2x2x1
jax: 0.10.0
libtpu: 0.0.40
codegen_flags: <defaults>
</compile_context>

<pallas_src>
import numpy as np
import jax
import jax.numpy as jnp
from jax.experimental import pallas as pl
from jax.experimental.pallas import tpu as pltpu

# Fixed (non-trainable) 5x5 Gaussian kernel from the module's __init__.
GAUSS_5x5 = [
    [0.00078633, 0.00655965, 0.01330373, 0.00655965, 0.00078633],
    [0.00655965, 0.05472157, 0.11098164, 0.05472157, 0.00655965],
    [0.01330373, 0.11098164, 0.22508352, 0.11098164, 0.01330373],
    [0.00655965, 0.05472157, 0.11098164, 0.05472157, 0.00655965],
    [0.00078633, 0.00655965, 0.01330373, 0.00655965, 0.00078633],
]
_K_NP = np.array(GAUSS_5x5, dtype=np.float64)

# Best rank-1 (separable) factorization of the table: K ~= taps (outer) taps.
# Residual is ~1e-7 per weight, far inside the test tolerance.
_u, _s, _ = np.linalg.svd(_K_NP)
_taps = np.sqrt(_s[0]) * _u[:, 0]
if _taps.sum() < 0:
    _taps = -_taps
TAPS = tuple(float(t) for t in _taps)          # 5 compile-time scalar constants


def gaussian_blur_kernel(x_ref, o_ref):
    # x_ref: (1, H, W+4) one (image, channel) slab, width right-padded by 4.
    # o_ref: (1, H-4, W) full-width output block (lane-dense store); its last
    #        4 columns come from the padding and are dropped in the wrapper.
    ho = o_ref.shape[1]
    w = o_ref.shape[2]

    x = x_ref[0]                                  # (H, W+4)
    if x.dtype != jnp.float32:                    # guarded: no-op for f32 input
        x = x.astype(jnp.float32)

    # Vertical 5-tap pass (sublane-offset reads, full lane width).
    y = TAPS[0] * x[0:ho, :]
    for d in range(1, 5):
        y = y + TAPS[d] * x[d:d + ho, :]          # (H-4, W+4)

    # Horizontal 5-tap pass. Thanks to the +4 width padding every tap is a
    # full-W slice, so the accumulator (and the store below) stays lane-dense.
    z = TAPS[0] * y[:, 0:w]
    for d in range(1, 5):
        z = z + TAPS[d] * y[:, d:d + w]           # (H-4, W)

    if z.dtype != o_ref.dtype:                    # guarded: no-op for f32 output
        z = z.astype(o_ref.dtype)
    o_ref[0] = z


def gaussian_blur2(x):
    """Pallas equivalent of GaussianBlur2.forward. x: (N, C>=3, H, W)."""
    n, c, h, w = x.shape
    assert c >= 3, "module reads channels 0, 1, 2"
    assert h >= 5 and w >= 5, "valid 5x5 conv needs H >= 5 and W >= 5"
    ho, wo = h - 4, w - 4

    # Fuse batch and the 3 blurred channels into one grid axis and right-pad
    # the width by 4 (keeps every horizontal tap full-width -> lane-dense
    # output stores; the padded columns are discarded below).
    xr = x[:, :3].reshape(n * 3, h, w)
    xp = jnp.pad(xr, ((0, 0), (0, 0), (0, 4)))

    itemsize = jnp.dtype(x.dtype).itemsize
    blk_bytes = (h * (w + 4) + ho * w) * itemsize          # one in + one out block
    # Double-buffered blocks + slack; capped below v7x's 64 MiB physical VMEM.
    vmem_bytes = int(min(max(32 << 20, 2 * blk_bytes + (4 << 20)), 48 << 20))
    # NOTE: a single (1, H, W+4) block must fit VMEM. For multi-thousand-pixel
    # images the next step is H-stripe tiling with a 4-row halo (overlapping
    # blocks via element-offset index maps or manual DMA); unnecessary at the
    # preprocessing image sizes this module targets.

    out = pl.pallas_call(
        gaussian_blur_kernel,
        out_shape=jax.ShapeDtypeStruct((n * 3, ho, w), x.dtype),
        grid=(n * 3,),
        in_specs=[pl.BlockSpec((1, h, w + 4), lambda i: (i, 0, 0))],
        out_specs=pl.BlockSpec((1, ho, w), lambda i: (i, 0, 0)),
        compiler_params=pltpu.CompilerParams(
            dimension_semantics=("parallel",),
            vmem_limit_bytes=vmem_bytes),
    )(xp)

    # Drop the padded garbage columns and restore (N, 3, H-4, W-4).
    return out[:, :, :wo].reshape(n, 3, ho, wo)


def _reference(x):
    # Pure-JAX reference using the EXACT hard-coded 5x5 table (same math as
    # the PyTorch module, up to f32 accumulation order).
    k = jnp.asarray(_K_NP, jnp.float32)[None, None]        # OIHW (1,1,5,5)
    outs = []
    for ch in range(3):
        xi = x[:, ch:ch + 1].astype(jnp.float32)
        outs.append(jax.lax.conv_general_dilated(
            xi, k, window_strides=(1, 1), padding="VALID",
            dimension_numbers=("NCHW", "OIHW", "NCHW")))
    return jnp.concatenate(outs, axis=1).astype(x.dtype)


if __name__ == "__main__":
    key = jax.random.PRNGKey(0)
    x = jax.random.normal(key, (2, 4, 16, 16), dtype=jnp.float32)

    out = jax.block_until_ready(gaussian_blur2(x))
    ref = jax.block_until_ready(_reference(x))

    assert out.shape == (2, 3, 12, 12), out.shape
    # atol 2e-5: the separable factorization reproduces the hard-coded table
    # to ~1e-7 per weight, which shows up at the ~1e-6 level in the outputs.
    assert jnp.allclose(out, ref, atol=2e-5, rtol=1e-5), "mismatch vs reference"

    print("KERNEL_OK")
</pallas_src>

<mosaic_0001>
module attributes {stable_mosaic.version = 11 : i64} {
  func.func @gaussian_blur_kernel(%arg0: i32, %arg1: memref<1x16x20xf32, #tpu.memory_space<vmem>>, %arg2: memref<1x12x16xf32, #tpu.memory_space<vmem>>) attributes {dimension_semantics = [#tpu.dimension_semantics<parallel>], iteration_bounds = array<i64: 6>, scalar_prefetch = 0 : i64, scratch_operands = 0 : i64, tpu.core_type = #tpu.core_type<tc>, window_params = [{transform_indices = @transform_0, window_bounds = array<i64: 1, 16, 20>}, {transform_indices = @transform_1, window_bounds = array<i64: 1, 12, 16>}]} {
    %c0 = arith.constant 0 : index
    %c0_0 = arith.constant 0 : index
    %c0_1 = arith.constant 0 : index
    %0 = vector.load %arg1[%c0, %c0_0, %c0_1] : memref<1x16x20xf32, #tpu.memory_space<vmem>>, vector<1x16x20xf32>
    %1 = vector.shape_cast %0 : vector<1x16x20xf32> to vector<16x20xf32>
    %2 = vector.extract_strided_slice %1 {offsets = [0, 0], sizes = [12, 20], strides = [1, 1]} : vector<16x20xf32> to vector<12x20xf32>
    %cst = arith.constant 0.0280415174 : f32
    %3 = vector.broadcast %cst : f32 to vector<12x20xf32>
    %4 = arith.mulf %3, %2 : vector<12x20xf32>
    %5 = vector.extract_strided_slice %1 {offsets = [1, 0], sizes = [12, 20], strides = [1, 1]} : vector<16x20xf32> to vector<12x20xf32>
    %cst_2 = arith.constant 0.23392643 : f32
    %6 = vector.broadcast %cst_2 : f32 to vector<12x20xf32>
    %7 = arith.mulf %6, %5 : vector<12x20xf32>
    %8 = arith.addf %4, %7 : vector<12x20xf32>
    %9 = vector.extract_strided_slice %1 {offsets = [2, 0], sizes = [12, 20], strides = [1, 1]} : vector<16x20xf32> to vector<12x20xf32>
    %cst_3 = arith.constant 0.474429667 : f32
    %10 = vector.broadcast %cst_3 : f32 to vector<12x20xf32>
    %11 = arith.mulf %10, %9 : vector<12x20xf32>
    %12 = arith.addf %8, %11 : vector<12x20xf32>
    %13 = vector.extract_strided_slice %1 {offsets = [3, 0], sizes = [12, 20], strides = [1, 1]} : vector<16x20xf32> to vector<12x20xf32>
    %cst_4 = arith.constant 0.23392643 : f32
    %14 = vector.broadcast %cst_4 : f32 to vector<12x20xf32>
    %15 = arith.mulf %14, %13 : vector<12x20xf32>
    %16 = arith.addf %12, %15 : vector<12x20xf32>
    %17 = vector.extract_strided_slice %1 {offsets = [4, 0], sizes = [12, 20], strides = [1, 1]} : vector<16x20xf32> to vector<12x20xf32>
    %cst_5 = arith.constant 0.0280415174 : f32
    %18 = vector.broadcast %cst_5 : f32 to vector<12x20xf32>
    %19 = arith.mulf %18, %17 : vector<12x20xf32>
    %20 = arith.addf %16, %19 : vector<12x20xf32>
    %21 = vector.extract_strided_slice %20 {offsets = [0, 0], sizes = [12, 16], strides = [1, 1]} : vector<12x20xf32> to vector<12x16xf32>
    %cst_6 = arith.constant 0.0280415174 : f32
    %22 = vector.broadcast %cst_6 : f32 to vector<12x16xf32>
    %23 = arith.mulf %22, %21 : vector<12x16xf32>
    %24 = vector.extract_strided_slice %20 {offsets = [0, 1], sizes = [12, 16], strides = [1, 1]} : vector<12x20xf32> to vector<12x16xf32>
    %cst_7 = arith.constant 0.23392643 : f32
    %25 = vector.broadcast %cst_7 : f32 to vector<12x16xf32>
    %26 = arith.mulf %25, %24 : vector<12x16xf32>
    %27 = arith.addf %23, %26 : vector<12x16xf32>
    %28 = vector.extract_strided_slice %20 {offsets = [0, 2], sizes = [12, 16], strides = [1, 1]} : vector<12x20xf32> to vector<12x16xf32>
    %cst_8 = arith.constant 0.474429667 : f32
    %29 = vector.broadcast %cst_8 : f32 to vector<12x16xf32>
    %30 = arith.mulf %29, %28 : vector<12x16xf32>
    %31 = arith.addf %27, %30 : vector<12x16xf32>
    %32 = vector.extract_strided_slice %20 {offsets = [0, 3], sizes = [12, 16], strides = [1, 1]} : vector<12x20xf32> to vector<12x16xf32>
    %cst_9 = arith.constant 0.23392643 : f32
    %33 = vector.broadcast %cst_9 : f32 to vector<12x16xf32>
    %34 = arith.mulf %33, %32 : vector<12x16xf32>
    %35 = arith.addf %31, %34 : vector<12x16xf32>
    %36 = vector.extract_strided_slice %20 {offsets = [0, 4], sizes = [12, 16], strides = [1, 1]} : vector<12x20xf32> to vector<12x16xf32>
    %cst_10 = arith.constant 0.0280415174 : f32
    %37 = vector.broadcast %cst_10 : f32 to vector<12x16xf32>
    %38 = arith.mulf %37, %36 : vector<12x16xf32>
    %39 = arith.addf %35, %38 : vector<12x16xf32>
    %c0_11 = arith.constant 0 : index
    %c0_12 = arith.constant 0 : index
    %c0_13 = arith.constant 0 : index
    %40 = vector.load %arg2[%c0_11, %c0_12, %c0_13] : memref<1x12x16xf32, #tpu.memory_space<vmem>>, vector<1x12x16xf32>
    %41 = vector.shape_cast %40 : vector<1x12x16xf32> to vector<12x16xf32>
    %42 = vector.shape_cast %39 : vector<12x16xf32> to vector<1x12x16xf32>
    tpu.vector_store %arg2[%c0_11, %c0_12, %c0_13], %42 {strides = array<i32>} : memref<1x12x16xf32, #tpu.memory_space<vmem>>, vector<1x12x16xf32>,
    return
  }
  func.func @transform_0(%arg0: i32) -> (i32, i32, i32) {
    %c0_i32 = arith.constant 0 : i32
    %c0_i32_0 = arith.constant 0 : i32
    %c0_i32_1 = arith.constant 0 : i32
    return %arg0, %c0_i32, %c0_i32_0 : i32, i32, i32
  }
  func.func @transform_1(%arg0: i32) -> (i32, i32, i32) {
    %c0_i32 = arith.constant 0 : i32
    %c0_i32_0 = arith.constant 0 : i32
    %c0_i32_1 = arith.constant 0 : i32
    return %arg0, %c0_i32, %c0_i32_0 : i32, i32, i32
  }
}

</mosaic_0001>

<bundles_post_ra>
// kernel: tpu_custom_call.1
= control target key start
LH: loop header
LB: loop body
LE: loop exit
PB: predicated region body
PF: predicated region fallthrough
CT: control target
= control target key end

     0   :  { %6 = vsyncpa [#allocation3], 0  ;;  %s668_s0 = inlined_call_operand.hbm [shape: f32[6,16,20], index: 0, kind: input, shape index: {}]   ;;  %s669_s1 = inlined_call_operand.hbm [shape: f32[6,12,16], index: 1, kind: output, shape index: {}]  }
   0x1   :  { %8 = vsyncpa [#allocation3 + $0x1], 0 }
   0x2   :  { %9 = vsyncpa [#allocation4], 0 }
   0x3   :  { %11 = vsyncpa [#allocation4 + $0x1], 0  ;;  %s504_s6 = smov 0   ;;  %s506_s7 = smov 0  }
   0x4   :  { %s508_s8 = smov 0   ;;  %s510_s9 = smov 0  }
   0x5 LB: > { %s525_s10 = sadd.s32 4294967295, %s482_s9   ;;  %s316_s11 = sadd.s32 4294967294, %s482_s9   ;;  %s482_s9 = sphi %s510_s9, %s681_s9   ;;  %s478_s8 = sphi %s508_s8, %s680_s8   ;;  %s474_s7 = sphi %s506_s7, %s679_s7   ;;  %s470_s6 = sphi %s504_s6, %s678_s6  }
   0x6   : > { %s529_s12 = sadd.s32 1, %s482_s9   ;;  %s24_s13 = sadd.s32 1, %s478_s8 }
   0x7   : > { %s21_s14 = ssub.s32 %s482_s9, %s529_s12  ;;  %p31_p0 = scmp.ne.s32.totalorder %s478_s8, %s474_s7 }
   0x8   : > { %p22_p1 = scmp.eq.s32.totalorder %s21_s14, 0  ;;  %p32_p2 = scmp.eq.s32.totalorder %s482_s9, 0 }
   0x9   : > { %p37_p3 = scmp.ne.s32.totalorder %s474_s7, %s470_s6  ;;  %p38_p4 = scmp.eq.s32.totalorder %s525_s10, 0 }
   0xa   : > { %s541_s15 = scalar_select %p22_p1, %s478_s8, %s24_s13  }
   0xb   : > { %p543_p5 = por %p32_p2, %p31_p0  ;;  %p547_p6 = por %p38_p4, %p37_p3 }
   0xc   : > { %p61_p7 = scmp.eq.s32.totalorder %s525_s10, 5  ;;  %p67_p8 = scmp.eq.s32.totalorder %s316_s11, 5 }
   0xd   : > { %p344_p9 = scmp.lt.s32.totalorder %s482_s9, 6  ;;  %s87_s20 = sand.u32 1, %s478_s8  }
   0xe   : > { %p553_p10 = por %p61_p7, %p31_p0  ;;  %p557_p11 = por %p67_p8, %p37_p3 }
   0xf   : > { %s330_s21 = sshll.u32 %s482_s9, 8  ;;  %s319_s22 = sshll.u32 %s87_s20, 4 }
  0x10   : > { %s673_s18 = scalar_select %p553_p10, 1, 0 }
  0x11   : > { %s674_s19 = scalar_select %p557_p11, 1, 0 }
  0x12   : > { %s566_s25 = scalar_lea.hbm %s668_s0, %s330_s21  ;;  %s91_s26 = scalar_lea.vmem [#allocation2], %s319_s22 }
  0x13   : > { %s98_s27 = sshll.u32 %s91_s26, 4  ;;  %p570_p12 = pnand %p344_p9, %p543_p5  ;;  %s574_s27 = int_to_ptr.vmem [resolvable:$true] %s98_s27 }
  0x14   : > { %s576_s29 = scalar_lea.sflag [#allocation3], %s87_s20  ;;  %s386_s30 = scalar_lea.hbm %s566_s25, 256 }
  0x15   : > { %p387_p13 = scmp.ne.s32.totalorder %s566_s25, %s386_s30  ;;  %p388_p0 = pneg %p570_p12 }
  0x16   : > { %s391_s4 = scalar_lea.hbm %s668_s0, 1536  ;;  %p392_p3 = scmp.lt.u32.totalorder %s566_s25, %s668_s0 }
  0x17   : > { %p389_p1 = pnand %p388_p0, %p387_p13  ;;  %p393_p4 = scmp.lt.u32.totalorder %s391_s4, %s386_s30 }
  0x18   : > { %p395_p7 = scmp.lt.u32.totalorder %s386_s30, %s566_s25 }
  0x19   : > { %p390_p2 = pneg %p389_p1  ;;  %p394_p5 = por %p393_p4, %p392_p3 }
  0x1b   : > { %p396_p8 = por %p395_p7, %p394_p5 }
  0x1d   : > { %p397_p9 = pnand %p396_p8, %p390_p2 }
  0x1f   : > { %400 = shalt.err (!%p397_p9)
}
  0x20   : > { %s401_s13 = scalar_lea.vmem %s574_s27, 256  ;;  %s484_s14 = smov [#allocation2]  }
  0x21   : > { %p402_p13 = scmp.ne.s32.totalorder %s574_s27, %s401_s13  ;;  %s406_s16 = sshll.u32 %s484_s14, 4  ;;  %s407_s16 = int_to_ptr.vmem [resolvable:$false] %s406_s16 }
  0x22   : > { %s408_s20 = scalar_lea.vmem %s407_s16, 512  ;;  %p409_p10 = scmp.lt.s32.totalorder %s574_s27, %s407_s16 }
  0x23   : > { %p404_p1 = pnand %p402_p13, %p388_p0  ;;  %p410_p3 = scmp.lt.s32.totalorder %s408_s20, %s401_s13 }
  0x25   : > { %p405_p11 = pneg %p404_p1  ;;  %p411_p4 = por %p410_p3, %p409_p10 }
  0x27   : > { %p412_p5 = pnand %p411_p4, %p405_p11 }
  0x29   : > { %415 = shalt.err (!%p412_p5)
}
  0x2a   : > { %s485_s21 = smov 128   ;;  %s486_s22 = smov 8  }
  0x2b   : > { %339 = dma.hbm_to_vmem [thread:$0]  (!%p570_p12), %s566_s25, 256, %s574_s27, %s576_s29, %s485_s21, %s485_s21, %s486_s22  }
  0x2c   : > { %p322_p0 = scmp.ge.s32.totalorder %s482_s9, 1  ;;  %p106_p2 = scmp.lt.s32.totalorder %s482_s9, 7 }
  0x2e   : > { %p107_p7 = pnand %p322_p0, %p106_p2 }
  0x2f   : > { %s607_s23 = sand.u32 (!%p107_p7), 1, %s474_s7  }
  0x30   : > { %110 = sbr.rel (%p107_p7) target bundleno = 216 (0xd8), region = 24  ;;  %s323_s24 = sshll.u32 (!%p107_p7), %s607_s23, 4 }
  0x31   : > { %s113_s26 = scalar_lea.sflag (!%p107_p7), [#allocation3], %s607_s23  ;;  %s116_s30 = scalar_lea.vmem (!%p107_p7), [#allocation2], %s323_s24 }
  0x37   : > { %461 = dma.done.wait (%p547_p6), %s113_s26, 256  }
  0x38   : > { %463 = vsyncadd (%p547_p6), %s113_s26, 4294967040  ;;  %v136_v0 = vld [vmem:[%s116_s30 + $0x8] sm:$0xff]  ;;  %v135_v1 = vld [vmem:[%s116_s30] sm:$0xff]  ;;  %vm143_vm0 = vcmask 1046528   ;;  %vm155_vm1 = vcmask 1045504   ;;  %vm163_vm2 = vcmask 1044480  }
  0x39   : > { %v138_v2 = vmul.f32 0.028041517, %v136_v0  ;;  %v140_v3 = vmul.f32 0.23392643, %v136_v0  ;;  %v152_v4 = vmul.f32 0.47442967, %v136_v0 }
  0x3a   : > { %v139_v5 = vmul.f32 0.23392643, %v135_v1  ;;  %v151_v6 = vmul.f32 0.47442967, %v135_v1  ;;  %v137_v9 = vmul.f32 0.028041517, %v135_v1 }
  0x3b   : > { %v145_v7 = vrot.slane %v140_v3, 1  ;;  %v157_v8 = vrot.slane %v152_v4, 2  ;;  %v165_v14 = vrot.slane %v140_v3, 3  ;;  %v175_v19 = vrot.slane %v138_v2, 4  ;;  %s487_s17 = smov 126   ;;  %s488_s25 = smov 127  }
  0x3c   : > { %v144_v10 = vrot.slane %v139_v5, 1  ;;  %v156_v11 = vrot.slane %v151_v6, 2  ;;  %v164_v12 = vrot.slane %v139_v5, 3  ;;  %v174_v17 = vrot.slane %v137_v9, 4  ;;  %s489_s27 = smov 125   ;;  %s490_s28 = smov 124  }
  0x3d   : > { %v150_v13 = vadd.f32 %v145_v7, %v138_v2  ;;  %vm173_vm3 = vcmask 1043456   ;;  %s134_s29 = scalar_lea.vmem [#allocation5], %s323_s24  ;;  %s331_s3 = sshll.u32 %s525_s10, 8  ;;  %vm227_vm4 = vcmask 125952   ;;  %vm225_vm5 = vcmask 130048  }
  0x3e   : > { %v146_v15 = vsel %vm143_vm0, %v144_v10, %v145_v7  ;;  %v158_v16 = vsel %vm155_vm1, %v156_v11, %v157_v8  ;;  %v166_v21 = vsel %vm163_vm2, %v164_v12, %v165_v14  ;;  %v176_v24 = vsel %vm173_vm3, %v174_v17, %v175_v19  ;;  %s243_s2 = sshll.u32 %s134_s29, 4  ;;  %s625_s11 = scalar_lea.hbm %s669_s1, %s331_s3  ;;  %s620_s2 = int_to_ptr.vmem [resolvable:$true] %s243_s2 }
  0x3f   : > { %v162_v18 = vadd.f32 %v157_v8, %v150_v13  ;;  %v149_v20 = vadd.f32 %v146_v15, %v137_v9  ;;  %s230_s10 = scalar_lea.sflag [#allocation4], %s607_s23  ;;  %s416_s13 = scalar_lea.vmem %s620_s2, 256 }
  0x40   : > { %p417_p6 = scmp.ne.s32.totalorder %s620_s2, %s416_s13  ;;  %p676_p10 = scmp.ne.s32.totalorder %s673_s18, 0 }
  0x41   : > { %v170_v22 = vadd.f32 %v165_v14, %v162_v18  ;;  %v161_v23 = vadd.f32 %v158_v16, %v149_v20  ;;  %s491_s14 = smov [#allocation5]  }
  0x42   : > { %p418_p11 = pnand %p417_p6, %p676_p10  ;;  %s420_s16 = sshll.u32 %s491_s14, 4  ;;  %s421_s16 = int_to_ptr.vmem [resolvable:$false] %s420_s16 }
  0x43   : > { %v180_v25 = vadd.f32 %v175_v19, %v170_v22  ;;  %v169_v26 = vadd.f32 %v166_v21, %v161_v23  ;;  %s422_s20 = scalar_lea.vmem %s421_s16, 512  ;;  %p423_p8 = scmp.lt.s32.totalorder %s620_s2, %s421_s16 }
  0x44   : > { %p419_p12 = pneg %p418_p11  ;;  %p424_p9 = scmp.lt.s32.totalorder %s422_s20, %s416_s13 }
  0x45   : > { %v196_v27 = vmul.f32 0.47442967, %v180_v25  ;;  %v184_v28 = vmul.f32 0.23392643, %v180_v25  ;;  %v179_v29 = vadd.f32 %v176_v24, %v169_v26  ;;  %v182_v32 = vmul.f32 0.028041517, %v180_v25 }
  0x46   : > { %p425_p13 = por %p424_p9, %p423_p8 }
  0x47   : > { %201 = vrot.lane.b32.xlu1 %v196_v27, %s487_s17  ;;  %189 = vrot.lane.b32.xlu0 %v184_v28, %s488_s25  ;;  %v183_v30 = vmul.f32 0.23392643, %v179_v29  ;;  %v195_v31 = vmul.f32 0.47442967, %v179_v29  ;;  %v181_v33 = vmul.f32 0.028041517, %v179_v29 }
  0x48   : > { %p426_p1 = pnand %p425_p13, %p419_p12 }
  0x4b   : > { %209 = vrot.lane.b32.xlu1 %v184_v28, %s489_s27  ;;  %187 = vrot.lane.b32.xlu0 %v183_v30, %s488_s25 }
  0x4f   : > { %199 = vrot.lane.b32.xlu1 %v195_v31, %s487_s17  ;;  %207 = vrot.lane.b32.xlu0 %v183_v30, %s489_s27 }
  0x53   : > { %219 = vrot.lane.b32.xlu1 %v182_v32, %s490_s28  ;;  %217 = vrot.lane.b32.xlu0 %v181_v33, %s490_s28 }
  0xb9   : > { %v202_v34 = vpop.permute.xlu1 %201  ;;  %v190_v35 = vpop.permute.xlu0 %189 }
  0xba   : > { %v194_v36 = vadd.f32 %v190_v35, %v182_v32 }
  0xbc   : > { %v206_v39 = vadd.f32 %v202_v34, %v194_v36 }
  0xbd   : > { %v210_v37 = vpop.permute.xlu1 %209  ;;  %v188_v38 = vpop.permute.xlu0 %187 }
  0xbe   : > { %v193_v40 = vadd.f32 %v188_v38, %v181_v33  ;;  %v214_v44 = vadd.f32 %v210_v37, %v206_v39 }
  0xc1   : > { %v200_v41 = vpop.permute.xlu1 %199  ;;  %v208_v42 = vpop.permute.xlu0 %207 }
  0xc2   : > { %v205_v43 = vadd.f32 %v200_v41, %v193_v40 }
  0xc4   : > { %v213_v45 = vadd.f32 %v208_v42, %v205_v43 }
  0xc5   : > { %v220_v46 = vpop.permute.xlu1 %219  ;;  %v218_v47 = vpop.permute.xlu0 %217 }
  0xc6   : > { %v224_v48 = vadd.f32 %v220_v46, %v214_v44  ;;  %v223_v49 = vadd.f32 %v218_v47, %v213_v45 }
  0xc8   : > { %228 = vst.msk [vmem:[%s134_s29 + $0x8] sm:$0xf] %vm227_vm4, %v224_v48 }
  0xc9   : > { %226 = vst.msk [vmem:[%s134_s29] sm:$0xff] %vm225_vm5, %v223_v49 }
  0xca   : > { %429 = shalt.err (!%p426_p1)
}
  0xcb   : > { %s430_s21 = scalar_lea.hbm %s625_s11, 256  ;;  %s434_s26 = scalar_lea.hbm %s669_s1, 1536 }
  0xcc   : > { %p431_p3 = scmp.ne.s32.totalorder %s625_s11, %s430_s21  ;;  %p435_p0 = scmp.lt.u32.totalorder %s625_s11, %s669_s1 }
  0xcd   : > { %p436_p2 = scmp.lt.u32.totalorder %s434_s26, %s430_s21  ;;  %p438_p6 = scmp.lt.u32.totalorder %s430_s21, %s625_s11 }
  0xce   : > { %p432_p4 = pnand %p431_p3, %p676_p10 }
  0xcf   : > { %p437_p7 = por %p436_p2, %p435_p0 }
  0xd0   : > { %p433_p5 = pneg %p432_p4 }
  0xd1   : > { %p439_p11 = por %p438_p6, %p437_p7 }
  0xd3   : > { %p440_p12 = pnand %p439_p11, %p433_p5 }
  0xd5   : > { %443 = shalt.err (!%p440_p12)
}
  0xd6   : > { %s492_s25 = smov 128   ;;  %s493_s27 = smov 8  }
  0xd7   : > { %334 = dma.vmem_to_hbm [thread:$0]  (%p676_p10), %s620_s2, 256, %s625_s11, %s230_s10, %s492_s25, %s492_s25, %s493_s27  }
  0xd8 PF: > { %p345_p8 = scmp.ge.s32.totalorder %s482_s9, 2  ;;  %s258_s28 = sand.u32 1, %s470_s6  }
  0xd9   : > { %p677_p9 = scmp.ne.s32.totalorder %s674_s19, 0  ;;  %s259_s29 = scalar_lea.sflag [#allocation4], %s258_s28 }
  0xdb   : > { %p341_p13 = pnand %p345_p8, %p677_p9 }
  0xdd   : > { %465 = dma.done.wait (!%p341_p13), %s259_s29, 256  }
  0xde   : > { %467 = vsyncadd (!%p341_p13), %s259_s29, 4294967040  ;;  %p14_p1 = scmp.ge.s32.totalorder %s529_s12, 8   ;;  %s678_s6 = smov %s474_s7 }
  0xdf   : > { %s679_s7 = smov %s478_s8  ;;  %s680_s8 = smov %s541_s15 }
  0xe0   : > { %s681_s9 = smov %s529_s12  ;;  %16 = sbr.rel (!%p14_p1) target bundleno = 5 (0x5), region = 69 }
  0xe7   :  { %264 = vsyncpa [#allocation3], 1 }
  0xe8   :  { %266 = vsyncpa [#allocation3 + $0x1], 1 }
  0xe9   :  { %267 = vsyncpa [#allocation4], 1 }
  0xea   :  { %269 = vsyncpa [#allocation4 + $0x1], 1 }

</bundles_post_ra>
